<compile_context>
chip_gen: v7x
topology: tpu7x:2x2x1
jax: 0.10.0
libtpu: 0.0.40
codegen_flags: <defaults>
</compile_context>

<pallas_src>
import jax
import jax.numpy as jnp
from jax import lax
from jax.experimental import pallas as pl
from jax.experimental.pallas import tpu as pltpu


def linear_time_kernel(x_ref, w_ref, b_ref, o_ref):
    """One batch element per grid step.

    x_ref : (1, c_in, P + Kt - 1)  VMEM  (x flattened over (N, L), right-padded)
    w_ref : (Kt, c_out, c_in)      VMEM  (w[k, o, c] = weight[o, c, 0, k])
    b_ref : (c_out, 1)             VMEM
    o_ref : (1, c_out, P)          VMEM  (P = N * L, lane-dense output slab)
    """
    Kt = w_ref.shape[0]
    P = o_ref.shape[2]

    # Tap 0 initializes the f32 accumulator; remaining taps accumulate.
    # Each tap = one MXU matmul over the channel axis on a lane-dense RHS.
    acc = jnp.dot(w_ref[0], x_ref[0, :, pl.ds(0, P)],
                  preferred_element_type=jnp.float32)
    for k in range(1, Kt):  # Kt is a small static constant -> unrolled
        acc = acc + jnp.dot(w_ref[k], x_ref[0, :, pl.ds(k, P)],
                            preferred_element_type=jnp.float32)

    # Single bias add (broadcast over the lane axis), lane-dense store.
    o_ref[0] = (acc + b_ref[...]).astype(o_ref.dtype)


def linear_time_forward(x, weight, bias):
    """Pallas forward pass of linear_time (Conv2d with kernel (1, Kt)).

    x      : [B, c_in, N, L] float32
    weight : [c_out, c_in, 1, Kt]
    bias   : [c_out]
    returns: [B, c_out, N, L - Kt + 1]
    """
    B, c_in, N, L = x.shape
    c_out, c_in_w, kh, Kt = weight.shape
    assert c_in_w == c_in and kh == 1
    L_out = L - Kt + 1
    P = N * L
    P_pad = P + Kt - 1

    # Layout plumbing (cheap XLA ops): flatten (N, L) -> P lanes and right-pad
    # Kt-1 lanes so every tap reads a fixed-width window.  Positions with
    # t >= L_out pick up cross-node garbage and are cropped below.
    x_flat = x.reshape(B, c_in, P)
    x_pad = jnp.pad(x_flat, ((0, 0), (0, 0), (0, Kt - 1))) if Kt > 1 else x_flat

    w = jnp.transpose(weight[:, :, 0, :], (2, 0, 1)).astype(jnp.float32)  # (Kt, c_out, c_in)
    b2 = bias.reshape(c_out, 1).astype(jnp.float32)

    itemsize = jnp.dtype(x.dtype).itemsize
    cost = pl.CostEstimate(
        flops=2 * B * c_out * c_in * Kt * P,
        transcendentals=0,
        bytes_accessed=int((x_pad.size + w.size + b2.size) * 4
                           + B * c_out * P * itemsize),
    )

    out_flat = pl.pallas_call(
        linear_time_kernel,
        out_shape=jax.ShapeDtypeStruct((B, c_out, P), x.dtype),
        grid=(B,),
        in_specs=[
            pl.BlockSpec((1, c_in, P_pad), lambda bi: (bi, 0, 0)),
            pl.BlockSpec((Kt, c_out, c_in), lambda bi: (0, 0, 0)),
            pl.BlockSpec((c_out, 1), lambda bi: (0, 0)),
        ],
        out_specs=pl.BlockSpec((1, c_out, P), lambda bi: (bi, 0, 0)),
        compiler_params=pltpu.CompilerParams(
            dimension_semantics=("parallel",)),
        cost_estimate=cost,
    )(x_pad, w, b2)

    # Crop the invalid temporal positions (t >= L_out) per node.
    return out_flat.reshape(B, c_out, N, L)[:, :, :, :L_out]


def linear_time_reference(x, weight, bias):
    """Plain-JAX transcription of torch.nn.Conv2d((1,Kt), valid, stride 1)."""
    out = lax.conv_general_dilated(
        x, weight, window_strides=(1, 1), padding="VALID",
        dimension_numbers=("NCHW", "OIHW", "NCHW"))
    return out + bias[None, :, None, None]


if __name__ == "__main__":
    B, c_in, c_out, N, L, Kt = 2, 4, 8, 16, 16, 3

    key = jax.random.PRNGKey(0)
    kx, kw, kb = jax.random.split(key, 3)

    x = jax.random.normal(kx, (B, c_in, N, L), dtype=jnp.float32)
    fan_in = c_in * Kt
    weight = jax.random.normal(kw, (c_out, c_in, 1, Kt),
                               dtype=jnp.float32) / jnp.sqrt(fan_in)
    bias = 0.1 * jax.random.normal(kb, (c_out,), dtype=jnp.float32)

    out = linear_time_forward(x, weight, bias)
    out = jax.block_until_ready(out)

    ref = linear_time_reference(x, weight, bias)

    assert out.shape == (B, c_out, N, L - Kt + 1), out.shape
    assert jnp.allclose(out, ref, rtol=1e-4, atol=1e-4), (
        "mismatch vs reference, max abs err = %e"
        % float(jnp.max(jnp.abs(out - ref)))
    )
    print("KERNEL_OK")
</pallas_src>

<mosaic_0001>
module attributes {stable_mosaic.version = 11 : i64} {
  func.func @linear_time_kernel(%arg0: i32, %arg1: memref<1x4x258xf32, #tpu.memory_space<vmem>>, %arg2: memref<3x8x4xf32, #tpu.memory_space<vmem>>, %arg3: memref<8x1xf32, #tpu.memory_space<vmem>>, %arg4: memref<1x8x256xf32, #tpu.memory_space<vmem>>) attributes {dimension_semantics = [#tpu.dimension_semantics<parallel>], iteration_bounds = array<i64: 2>, scalar_prefetch = 0 : i64, scratch_operands = 0 : i64, tpu.core_type = #tpu.core_type<tc>, window_params = [{transform_indices = @transform_0, window_bounds = array<i64: 1, 4, 258>}, {pipeline_mode = #tpu.pipeline_mode<synchronous>, transform_indices = @transform_1, window_bounds = array<i64: 3, 8, 4>}, {pipeline_mode = #tpu.pipeline_mode<synchronous>, transform_indices = @transform_2, window_bounds = array<i64: 8, 1>}, {transform_indices = @transform_3, window_bounds = array<i64: 1, 8, 256>}]} {
    %c0 = arith.constant 0 : index
    %c0_0 = arith.constant 0 : index
    %c0_1 = arith.constant 0 : index
    %0 = vector.load %arg2[%c0, %c0_0, %c0_1] : memref<3x8x4xf32, #tpu.memory_space<vmem>>, vector<1x8x4xf32>
    %1 = vector.shape_cast %0 : vector<1x8x4xf32> to vector<8x4xf32>
    %c0_2 = arith.constant 0 : index
    %c0_3 = arith.constant 0 : index
    %c0_4 = arith.constant 0 : index
    %2 = vector.load %arg1[%c0_2, %c0_3, %c0_4] : memref<1x4x258xf32, #tpu.memory_space<vmem>>, vector<1x4x256xf32>
    %3 = vector.shape_cast %2 : vector<1x4x256xf32> to vector<4x256xf32>
    %cst = arith.constant dense<0.000000e+00> : vector<8x256xf32>
    %4 = tpu.matmul %1, %3, %cst {dimension_numbers = #tpu.dot_dimension_numbers<[1], [0], [0], [1], [0, 0, 1, 1], [], []>} : vector<8x4xf32>, vector<4x256xf32>, vector<8x256xf32> -> vector<8x256xf32>
    %c1 = arith.constant 1 : index
    %c0_5 = arith.constant 0 : index
    %c0_6 = arith.constant 0 : index
    %5 = vector.load %arg2[%c1, %c0_5, %c0_6] : memref<3x8x4xf32, #tpu.memory_space<vmem>>, vector<1x8x4xf32>
    %6 = vector.shape_cast %5 : vector<1x8x4xf32> to vector<8x4xf32>
    %c0_7 = arith.constant 0 : index
    %c0_8 = arith.constant 0 : index
    %c1_9 = arith.constant 1 : index
    %7 = vector.load %arg1[%c0_7, %c0_8, %c1_9] : memref<1x4x258xf32, #tpu.memory_space<vmem>>, vector<1x4x256xf32>
    %8 = vector.shape_cast %7 : vector<1x4x256xf32> to vector<4x256xf32>
    %cst_10 = arith.constant dense<0.000000e+00> : vector<8x256xf32>
    %9 = tpu.matmul %6, %8, %cst_10 {dimension_numbers = #tpu.dot_dimension_numbers<[1], [0], [0], [1], [0, 0, 1, 1], [], []>} : vector<8x4xf32>, vector<4x256xf32>, vector<8x256xf32> -> vector<8x256xf32>
    %10 = arith.addf %4, %9 : vector<8x256xf32>
    %c2 = arith.constant 2 : index
    %c0_11 = arith.constant 0 : index
    %c0_12 = arith.constant 0 : index
    %11 = vector.load %arg2[%c2, %c0_11, %c0_12] : memref<3x8x4xf32, #tpu.memory_space<vmem>>, vector<1x8x4xf32>
    %12 = vector.shape_cast %11 : vector<1x8x4xf32> to vector<8x4xf32>
    %c0_13 = arith.constant 0 : index
    %c0_14 = arith.constant 0 : index
    %c2_15 = arith.constant 2 : index
    %13 = vector.load %arg1[%c0_13, %c0_14, %c2_15] : memref<1x4x258xf32, #tpu.memory_space<vmem>>, vector<1x4x256xf32>
    %14 = vector.shape_cast %13 : vector<1x4x256xf32> to vector<4x256xf32>
    %cst_16 = arith.constant dense<0.000000e+00> : vector<8x256xf32>
    %15 = tpu.matmul %12, %14, %cst_16 {dimension_numbers = #tpu.dot_dimension_numbers<[1], [0], [0], [1], [0, 0, 1, 1], [], []>} : vector<8x4xf32>, vector<4x256xf32>, vector<8x256xf32> -> vector<8x256xf32>
    %16 = arith.addf %10, %15 : vector<8x256xf32>
    %c0_17 = arith.constant 0 : index
    %c0_18 = arith.constant 0 : index
    %17 = vector.load %arg3[%c0_17, %c0_18] : memref<8x1xf32, #tpu.memory_space<vmem>>, vector<8x1xf32>
    %18 = vector.broadcast %17 : vector<8x1xf32> to vector<8x256xf32>
    %19 = arith.addf %16, %18 : vector<8x256xf32>
    %c0_19 = arith.constant 0 : index
    %c0_20 = arith.constant 0 : index
    %c0_21 = arith.constant 0 : index
    %20 = vector.load %arg4[%c0_19, %c0_20, %c0_21] : memref<1x8x256xf32, #tpu.memory_space<vmem>>, vector<1x8x256xf32>
    %21 = vector.shape_cast %20 : vector<1x8x256xf32> to vector<8x256xf32>
    %22 = vector.shape_cast %19 : vector<8x256xf32> to vector<1x8x256xf32>
    tpu.vector_store %arg4[%c0_19, %c0_20, %c0_21], %22 {strides = array<i32>} : memref<1x8x256xf32, #tpu.memory_space<vmem>>, vector<1x8x256xf32>,
    return
  }
  func.func @transform_0(%arg0: i32) -> (i32, i32, i32) {
    %c0_i32 = arith.constant 0 : i32
    %c0_i32_0 = arith.constant 0 : i32
    %c0_i32_1 = arith.constant 0 : i32
    return %arg0, %c0_i32, %c0_i32_0 : i32, i32, i32
  }
  func.func @transform_1(%arg0: i32) -> (i32, i32, i32) {
    %c0_i32 = arith.constant 0 : i32
    %c0_i32_0 = arith.constant 0 : i32
    %c0_i32_1 = arith.constant 0 : i32
    %c0_i32_2 = arith.constant 0 : i32
    return %c0_i32, %c0_i32_0, %c0_i32_1 : i32, i32, i32
  }
  func.func @transform_2(%arg0: i32) -> (i32, i32) {
    %c0_i32 = arith.constant 0 : i32
    %c0_i32_0 = arith.constant 0 : i32
    %c0_i32_1 = arith.constant 0 : i32
    return %c0_i32, %c0_i32_0 : i32, i32
  }
  func.func @transform_3(%arg0: i32) -> (i32, i32, i32) {
    %c0_i32 = arith.constant 0 : i32
    %c0_i32_0 = arith.constant 0 : i32
    %c0_i32_1 = arith.constant 0 : i32
    return %arg0, %c0_i32, %c0_i32_0 : i32, i32, i32
  }
}

</mosaic_0001>

<bundles_post_ra>
// kernel: tpu_custom_call.1
= control target key start
LH: loop header
LB: loop body
LE: loop exit
PB: predicated region body
PF: predicated region fallthrough
CT: control target
= control target key end

     0   :  { %8 = vsyncpa [#allocation3], 0  ;;  %s807_s0 = inlined_call_operand.vmem [shape: f32[2,4,258], index: 0, kind: input, shape index: {}]   ;;  %s808_s1 = inlined_call_operand.vmem [shape: f32[3,8,4], index: 1, kind: input, shape index: {}]   ;;  %s809_s2 = inlined_call_operand.vmem [shape: f32[8,1], index: 2, kind: input, shape index: {}]   ;;  %s810_s3 = inlined_call_operand.hbm [shape: f32[2,8,256], index: 3, kind: output, shape index: {}]  }
   0x1   :  { %10 = vsyncpa [#allocation3 + $0x1], 0  ;;  %s686_s12 = smov 0   ;;  %s688_s13 = smov 0  }
   0x2   :  { %s690_s14 = smov 0   ;;  %s692_s15 = smov 0  }
   0x3 LB: > { %s707_s16 = sadd.s32 4294967295, %s659_s15   ;;  %s524_s17 = sadd.s32 4294967294, %s659_s15   ;;  %s659_s15 = sphi %s692_s15, %s816_s15   ;;  %s655_s14 = sphi %s690_s14, %s815_s14   ;;  %s651_s13 = sphi %s688_s13, %s814_s13   ;;  %s647_s12 = sphi %s686_s12, %s813_s12  }
   0x4   : > { %s711_s18 = sadd.s32 1, %s659_s15   ;;  %s91_s19 = sadd.s32 1, %s655_s14 }
   0x5   : > { %s88_s20 = ssub.s32 %s659_s15, %s711_s18  ;;  %p101_p0 = scmp.ne.s32.totalorder %s655_s14, %s651_s13 }
   0x6   : > { %p89_p1 = scmp.eq.s32.totalorder %s88_s20, 0  ;;  %p102_p2 = scmp.eq.s32.totalorder %s707_s16, 1 }
   0x7   : > { %p107_p3 = scmp.ne.s32.totalorder %s651_s13, %s647_s12  ;;  %p108_p4 = scmp.eq.s32.totalorder %s524_s17, 1 }
   0x8   : > { %s722_s21 = scalar_select %p89_p1, %s655_s14, %s91_s19  }
   0x9   : > { %p724_p5 = por %p102_p2, %p101_p0  ;;  %p728_p6 = por %p108_p4, %p107_p3 }
   0xa   : > { %p527_p7 = scmp.ge.s32.totalorder %s659_s15, 1  ;;  %p140_p8 = scmp.lt.s32.totalorder %s659_s15, 3 }
   0xc   : > { %p141_p9 = pnand %p527_p7, %p140_p8 }
   0xd   : > { %p164_p10 = scmp.lt.s32.totalorder (!%p141_p9), %s707_s16, 1  ;;  %v661_v0 = vmov (!%p141_p9), 0.0   ;;  %v662_v1 = vmov (!%p141_p9), 0   ;;  %vm190_vm0 = vcmask (!%p141_p9), 1043456   ;;  %s663_s29 = smov (!%p141_p9), 126   ;;  %v169_v6 = vld [vmem:[%s808_s1] sm:$0xff] (!%p141_p9) }
   0xe   : > { %144 = sbr.rel (%p141_p9) target bundleno = 384 (0x180), region = 32  ;;  %337 = vmatprep.mubr.f32.mxu0 (!%p141_p9), %v661_v0  ;;  %259 = vmatprep.mubr.f32.mxu1 (!%p141_p9), %v661_v0  ;;  %s664_s30 = smov (!%p141_p9), 127   ;;  %vm186_vm1 = vcmask (!%p141_p9), 31744   ;;  %v440_v7 = vld [vmem:[%s809_s2] sm:$0xff] (!%p141_p9)  ;;  %vm357_vm2 = vcmask (!%p141_p9), 1031168   ;;  %vm183_vm3 = vcmask (!%p141_p9), 1039360  }
   0xf   : > { %595 = vset.pattern.permute.xlu0 (!%p141_p9), %v662_v1  ;;  %v530_v16 = vld [vmem:[%s808_s1 + $0x8] sm:$0xff] (!%p141_p9)  ;;  %v537_v17 = vld [vmem:[%s808_s1 + $0x10] sm:$0xff] (!%p141_p9)  ;;  %s161_s17 = sand.u32 (!%p141_p9), 1, %s651_s13   ;;  %s546_s20 = sshll.u32 (!%p141_p9), %s707_s16, 8 }
  0x10   : > { %s528_s19 = sshll.u32 (!%p141_p9), %s161_s17, 4 }
  0x15   : > { %s165_s24 = scalar_select %p164_p10, %s707_s16, 1 }
  0x16   : > { %s665_s16 = smov [#allocation2]  }
  0x17   : > { %s551_s25 = smul.u32 12, %s165_s24  ;;  %s163_s24 = scalar_lea.vmem [#allocation2], %s528_s19 }
  0x18   : > { %s601_s4 = sshll.u32 %s665_s16, 4  ;;  %s602_s4 = int_to_ptr.vmem [resolvable:$false] %s601_s4 }
  0x19   : > { %s168_s28 = scalar_lea.vmem %s807_s0, %s551_s25  ;;  %s465_s25 = sshll.u32 %s163_s24, 4  ;;  %s767_s25 = int_to_ptr.vmem [resolvable:$true] %s465_s25 }
  0x1a   : > { %v347_v2 = vld [vmem:[%s168_s28 + $0x8] sm:$0xf]  ;;  %v346_v4 = vld [vmem:[%s168_s28] sm:$0xff]  ;;  %s603_s5 = scalar_lea.vmem %s602_s4, 512  ;;  %p604_p0 = scmp.lt.s32.totalorder %s767_s25, %s602_s4 }
  0x1b   : > { %v173_v3 = vld [vmem:[%s168_s28 + $0x8] sm:$0xf]  ;;  %355 = vrot.lane.b32.xlu1 %v347_v2, %s663_s29  ;;  %v350_v5 = vcombine.high %v346_v4, %v346_v4  ;;  %s765_s28 = scalar_lea.hbm %s810_s3, %s546_s20 }
  0x1c   : > { %181 = vrot.lane.b32.xlu0 %v173_v3, %s664_s30 }
  0x1d   : > { %534 = vmatprep.subr.msk.mxu0 %vm190_vm0, %v350_v5 }
  0x1e   : > { %535 = vmatpush1.msk.msra.mxu0 %vm190_vm0, %v346_v4 }
  0x1f   : > { %353 = vrot.lane.b32.xlu1 %v350_v5, %s663_s29  ;;  %536 = vmatmul.mubr.msk.f32.vlgmr.msra.gmra.mrb[0].mxu0 %vm186_vm1, %v169_v6 }
  0x20   : > { %179 = vrot.lane.b32.xlu0 %v350_v5, %s664_s30  ;;  %431 = vmatprep.mubr.f32.mxu0 %v661_v0 }
  0x23   : > { %351 = vrot.lane.b32.xlu1 %v346_v4, %s663_s29  ;;  %s451_s29 = scalar_lea.sflag [#allocation3], %s161_s17 }
  0x24   : > { %177 = vrot.lane.b32.xlu0 %v346_v4, %s664_s30  ;;  %s597_s30 = scalar_lea.vmem %s767_s25, 256 }
  0x25   : > { %p598_p11 = scmp.ne.s32.totalorder %s767_s25, %s597_s30  ;;  %p605_p1 = scmp.lt.s32.totalorder %s603_s5, %s597_s30 }
  0x27   : > { %p599_p12 = pnand %p598_p11, %p724_p5  ;;  %p606_p2 = por %p605_p1, %p604_p0 }
  0x28   : > { %443 = vperm.xlu0 %595, %v440_v7  }
  0x29   : > { %p600_p13 = pneg %p599_p12 }
  0x2b   : > { %p607_p3 = pnand %p606_p2, %p600_p13 }
  0x8d   : > { %v356_v8 = vpop.permute.xlu1 %355 }
  0x8e   : > { %v182_v9 = vpop.permute.xlu0 %181 }
  0x91   : > { %v354_v10 = vpop.permute.xlu1 %353 }
  0x92   : > { %v180_v11 = vpop.permute.xlu0 %179  ;;  %v359_v12 = vsel %vm357_vm2, %v354_v10, %v356_v8 }
  0x93   : > { %v185_v13 = vsel %vm183_vm3, %v180_v11, %v182_v9  ;;  %538 = vmatprep.subr.msk.mxu0 %vm190_vm0, %v359_v12 }
  0x94   : > { %531 = vmatprep.subr.msk.mxu1 %vm190_vm0, %v185_v13 }
  0x95   : > { %v352_v14 = vpop.permute.xlu1 %351 }
  0x96   : > { %v178_v15 = vpop.permute.xlu0 %177  ;;  %v358_v18 = vsel %vm357_vm2, %v352_v14, %v354_v10 }
  0x97   : > { %v184_v19 = vsel %vm183_vm3, %v178_v15, %v180_v11  ;;  %539 = vmatpush1.msk.msra.mxu0 %vm190_vm0, %v358_v18 }
  0x98   : > { %532 = vmatpush1.msk.msra.mxu1 %vm190_vm0, %v184_v19  ;;  %540 = vmatmul.mubr.msk.f32.vlgmr.msra.gmra.mrb[0].mxu0 %vm186_vm1, %v537_v17 }
  0x99   : > { %533 = vmatmul.mubr.msk.f32.vlgmr.msra.gmra.mrb[0].mxu1 %vm186_vm1, %v530_v16 }
  0xa7   : > { %v444_v20 = vpop.permute.xlu0 %443 }
 0x16b   : > { %v433_v22 = vpop.f32.mrb[0].mxu0 }
 0x16c   : > { %v261_v21 = vpop.f32.mrb[0].mxu1  ;;  %v435_v25 = vpop.f32.mrb[1].mxu0 }
 0x16d   : > { %v547_v23 = vadd.f32 %v433_v22, %v261_v21  ;;  %v263_v24 = vpop.f32.mrb[1].mxu1 }
 0x16e   : > { %v548_v26 = vadd.f32 %v435_v25, %v263_v24 }
 0x16f   : > { %v446_v27 = vadd.f32 %v547_v23, %v444_v20 }
 0x170   : > { %v447_v28 = vadd.f32 %v548_v26, %v444_v20 }
 0x171   : > { %448 = vst [vmem:[%s163_s24] sm:$0xff] %v446_v27 }
 0x172   : > { %449 = vst [vmem:[%s163_s24 + $0x8] sm:$0xff] %v447_v28 }
 0x173   : > { %610 = shalt.err (!%p607_p3)
}
 0x174   : > { %s611_s6 = scalar_lea.hbm %s765_s28, 256  ;;  %s615_s9 = scalar_lea.hbm %s810_s3, 512 }
 0x175   : > { %p612_p4 = scmp.ne.s32.totalorder %s765_s28, %s611_s6  ;;  %p616_p9 = scmp.lt.u32.totalorder %s765_s28, %s810_s3 }
 0x176   : > { %p617_p10 = scmp.lt.u32.totalorder %s615_s9, %s611_s6  ;;  %p619_p12 = scmp.lt.u32.totalorder %s611_s6, %s765_s28 }
 0x177   : > { %p613_p7 = pnand %p612_p4, %p724_p5 }
 0x178   : > { %p618_p11 = por %p617_p10, %p616_p9 }
 0x179   : > { %p614_p8 = pneg %p613_p7 }
 0x17a   : > { %p620_p13 = por %p619_p12, %p618_p11 }
 0x17c   : > { %p621_p0 = pnand %p620_p13, %p614_p8 }
 0x17e   : > { %624 = shalt.err (!%p621_p0)
}
 0x17f   : > { %552 = dma.vmem_to_hbm [thread:$0]  (%p724_p5), %s767_s25, 256, %s765_s28, %s451_s29  }
 0x180 PF: > { %p558_p1 = scmp.ge.s32.totalorder %s659_s15, 2  ;;  %s477_s17 = sand.u32 1, %s647_s12  }
 0x181   : > { %s478_s19 = scalar_lea.sflag [#allocation3], %s477_s17 }
 0x182   : > { %p555_p2 = pnand %p558_p1, %p728_p6 }
 0x184   : > { %642 = dma.done.wait (!%p555_p2), %s478_s19, 256  }
 0x185   : > { %644 = vsyncadd (!%p555_p2), %s478_s19, 4294967040  ;;  %p13_p3 = scmp.ge.s32.totalorder %s711_s18, 4   ;;  %s813_s12 = smov %s651_s13 }
 0x186   : > { %s814_s13 = smov %s655_s14  ;;  %s815_s14 = smov %s722_s21 }
 0x187   : > { %s816_s15 = smov %s711_s18  ;;  %15 = sbr.rel (!%p13_p3) target bundleno = 3 (0x3), region = 69 }
 0x18e   :  { %483 = vsyncpa [#allocation3], 1 }
 0x18f   :  { %485 = vsyncpa [#allocation3 + $0x1], 1 }

</bundles_post_ra>
